<compile_context>
chip_gen: v5e
topology: v5e:2x2
jax: 0.10.0
libtpu: 0.0.40
codegen_flags: <defaults>
</compile_context>

<pallas_src>
import functools

import jax
import jax.numpy as jnp
from jax.experimental import pallas as pl
from jax.experimental.pallas import tpu as pltpu


# ----------------------------------------------------------------------------
# Kernels
# ----------------------------------------------------------------------------
def _pool_kernel(x_ref, sum_ref, *, inv_hw):
    """Global average pool: mean over the lane (H*W) axis per (n,c) row.

    x_ref:   (TM, TL) tile of the (M, L) slab.
    sum_ref: (TM, 1) resident accumulator (output block index constant over L).
    """
    l_idx = pl.program_id(1)

    @pl.when(l_idx == 0)
    def _():
        sum_ref[...] = jnp.zeros_like(sum_ref)

    sum_ref[...] += jnp.sum(x_ref[...].astype(jnp.float32), axis=1, keepdims=True)

    @pl.when(l_idx == pl.num_programs(1) - 1)
    def _():
        sum_ref[...] = sum_ref[...] * inv_hw


def _se_mlp_kernel(p_ref, w1_ref, b1_ref, w2_ref, b2_ref, s_ref):
    """Tiny SE MLP: sigmoid(silu(p @ W1^T + b1) @ W2^T + b2).

    All operands are zero-padded to (8,128)-aligned shapes by the wrapper.
    """
    p = p_ref[...]                                                      # (Np, Cp)
    h = jnp.dot(p, w1_ref[...], preferred_element_type=jnp.float32) + b1_ref[...]
    h = h * jax.nn.sigmoid(h)                                           # SiLU
    s = jnp.dot(h, w2_ref[...], preferred_element_type=jnp.float32) + b2_ref[...]
    s_ref[...] = jax.nn.sigmoid(s)


def _scale_kernel(x_ref, s_ref, o_ref):
    """out[m, l] = x[m, l] * scale[m, 0]  (lane-dense elementwise pass)."""
    o_ref[...] = (x_ref[...] * s_ref[...]).astype(o_ref.dtype)


# ----------------------------------------------------------------------------
# Tiling helpers
# ----------------------------------------------------------------------------
def _round_up(v, m):
    return ((v + m - 1) // m) * m


def _pick_tile(dim, target, align):
    """Largest tile <= target that is either the full dim or an aligned divisor."""
    if dim <= target:
        return dim
    t = (target // align) * align
    while t >= align:
        if dim % t == 0:
            return t
        t -= align
    return dim  # fall back to the full dim (always legal)


# ----------------------------------------------------------------------------
# Forward wrapper
# ----------------------------------------------------------------------------
def squeeze_excitation_forward(x, w1, b1, w2, b2):
    """x: (N, C, H, W); w1: (R, C, 1, 1); b1: (R,); w2: (C, R, 1, 1); b2: (C,).

    Returns x * sigmoid(conv2(silu(conv1(avgpool(x))))), same as the PyTorch
    SqueezeExcitation forward.
    """
    n, c, h, w = x.shape
    r = w1.shape[0]
    m = n * c
    l = h * w

    # Free (contiguous) view: rows = (n, c), lanes = (h, w).
    x2d = x.reshape(m, l)

    # Tile sizes: conservative so 2x double-buffered in+out blocks stay well
    # under the v7x 64 MiB/TC scoped-VMEM budget.
    tm = _pick_tile(m, 256, 8)
    tl = _pick_tile(l, 2048, 128)
    itemsize = jnp.dtype(x.dtype).itemsize

    # --- Pass 1: global average pool -> (M, 1) float32 means -----------------
    pooled = pl.pallas_call(
        functools.partial(_pool_kernel, inv_hw=1.0 / float(l)),
        out_shape=jax.ShapeDtypeStruct((m, 1), jnp.float32),
        grid=(m // tm, l // tl),
        in_specs=[pl.BlockSpec((tm, tl), lambda i, j: (i, j))],
        out_specs=pl.BlockSpec((tm, 1), lambda i, j: (i, 0)),
        compiler_params=pltpu.CompilerParams(
            dimension_semantics=("parallel", "arbitrary")),
        cost_estimate=pl.CostEstimate(
            flops=m * l, transcendentals=0,
            bytes_accessed=m * l * itemsize + m * 4),
    )(x2d)

    # --- Pass 2: tiny SE MLP on pooled values ---------------------------------
    # Zero-pad everything to MXU/vreg friendly shapes (bytes are negligible).
    np_pad = _round_up(n, 8)
    c_pad = _round_up(c, 128)
    r_pad = _round_up(r, 128)

    pooled_nc = pooled.reshape(n, c)
    p_pad = jnp.zeros((np_pad, c_pad), jnp.float32).at[:n, :c].set(pooled_nc)
    w1t = jnp.zeros((c_pad, r_pad), jnp.float32).at[:c, :r].set(
        jnp.transpose(w1.reshape(r, c)).astype(jnp.float32))
    b1p = jnp.zeros((1, r_pad), jnp.float32).at[0, :r].set(b1.astype(jnp.float32))
    w2t = jnp.zeros((r_pad, c_pad), jnp.float32).at[:r, :c].set(
        jnp.transpose(w2.reshape(c, r)).astype(jnp.float32))
    b2p = jnp.zeros((1, c_pad), jnp.float32).at[0, :c].set(b2.astype(jnp.float32))

    scales_pad = pl.pallas_call(
        _se_mlp_kernel,
        out_shape=jax.ShapeDtypeStruct((np_pad, c_pad), jnp.float32),
        in_specs=[pl.BlockSpec(memory_space=pltpu.MemorySpace.VMEM)] * 5,
        out_specs=pl.BlockSpec(memory_space=pltpu.MemorySpace.VMEM),
    )(p_pad, w1t, b1p, w2t, b2p)

    scales = scales_pad[:n, :c].reshape(m, 1).astype(jnp.float32)

    # --- Pass 3: lane-dense channel-wise scaling -------------------------------
    out2d = pl.pallas_call(
        _scale_kernel,
        out_shape=jax.ShapeDtypeStruct((m, l), x.dtype),
        grid=(m // tm, l // tl),
        in_specs=[
            pl.BlockSpec((tm, tl), lambda i, j: (i, j)),
            pl.BlockSpec((tm, 1), lambda i, j: (i, 0)),
        ],
        out_specs=pl.BlockSpec((tm, tl), lambda i, j: (i, j)),
        compiler_params=pltpu.CompilerParams(
            dimension_semantics=("parallel", "parallel")),
        cost_estimate=pl.CostEstimate(
            flops=m * l, transcendentals=0,
            bytes_accessed=2 * m * l * itemsize + m * 4),
    )(x2d, scales)

    return out2d.reshape(n, c, h, w)


# ----------------------------------------------------------------------------
# Demo / correctness check
# ----------------------------------------------------------------------------
if __name__ == "__main__":
    # SqueezeExcitation(in_channels=4, reduced_dim=2) on a (2, 4, 16, 16) input.
    N, C, H, W = 2, 4, 16, 16
    R = 2

    key = jax.random.PRNGKey(0)
    kx, k1, kb1, k2, kb2 = jax.random.split(key, 5)
    x = jax.random.normal(kx, (N, C, H, W), dtype=jnp.float32)
    w1 = jax.random.normal(k1, (R, C, 1, 1), dtype=jnp.float32) * 0.5
    b1 = jax.random.normal(kb1, (R,), dtype=jnp.float32) * 0.1
    w2 = jax.random.normal(k2, (C, R, 1, 1), dtype=jnp.float32) * 0.5
    b2 = jax.random.normal(kb2, (C,), dtype=jnp.float32) * 0.1

    out = squeeze_excitation_forward(x, w1, b1, w2, b2)
    jax.block_until_ready(out)

    # Pure-JAX reference of the PyTorch forward.
    pooled_ref = jnp.mean(x, axis=(2, 3))                              # (N, C)
    h1 = pooled_ref @ w1.reshape(R, C).T + b1                          # (N, R)
    h1 = h1 * jax.nn.sigmoid(h1)                                       # SiLU
    s_ref = jax.nn.sigmoid(h1 @ w2.reshape(C, R).T + b2)               # (N, C)
    ref = x * s_ref[:, :, None, None]

    assert out.shape == x.shape, out.shape
    max_err = float(jnp.max(jnp.abs(out - ref)))
    assert jnp.allclose(out, ref, atol=1e-5, rtol=1e-5), max_err
    print("KERNEL_OK")
</pallas_src>

<mosaic_0001>
module attributes {stable_mosaic.version = 11 : i64} {
  func.func @_pool_kernel(%arg0: i32, %arg1: i32, %arg2: memref<8x256xf32, #tpu.memory_space<vmem>>, %arg3: memref<8x1xf32, #tpu.memory_space<vmem>>) attributes {dimension_semantics = [#tpu.dimension_semantics<parallel>, #tpu.dimension_semantics<arbitrary>], iteration_bounds = array<i64: 1, 1>, scalar_prefetch = 0 : i64, scratch_operands = 0 : i64, tpu.core_type = #tpu.core_type<tc>, window_params = [{transform_indices = @transform_0, window_bounds = array<i64: 8, 256>}, {transform_indices = @transform_1, window_bounds = array<i64: 8, 1>}]} {
    %c0_i32 = arith.constant 0 : i32
    %0 = arith.cmpi eq, %arg1, %c0_i32 : i32
    %1 = arith.extui %0 : i1 to i32
    %c0_i32_0 = arith.constant 0 : i32
    %2 = arith.cmpi ne, %1, %c0_i32_0 : i32
    scf.if %2 {
      %cst_8 = arith.constant 0.000000e+00 : f32
      %12 = vector.broadcast %cst_8 : f32 to vector<8x1xf32>
      %c0_9 = arith.constant 0 : index
      %c0_10 = arith.constant 0 : index
      %13 = vector.load %arg3[%c0_9, %c0_10] : memref<8x1xf32, #tpu.memory_space<vmem>>, vector<8x1xf32>
      tpu.vector_store %arg3[%c0_9, %c0_10], %12 {strides = array<i32>} : memref<8x1xf32, #tpu.memory_space<vmem>>, vector<8x1xf32>,
    } else {
    }
    %c0 = arith.constant 0 : index
    %c0_1 = arith.constant 0 : index
    %3 = vector.load %arg3[%c0, %c0_1] : memref<8x1xf32, #tpu.memory_space<vmem>>, vector<8x1xf32>
    %c0_2 = arith.constant 0 : index
    %c0_3 = arith.constant 0 : index
    %4 = vector.load %arg2[%c0_2, %c0_3] : memref<8x256xf32, #tpu.memory_space<vmem>>, vector<8x256xf32>
    %cst = arith.constant dense<0.000000e+00> : vector<8xf32>
    %5 = vector.multi_reduction <add>, %4, %cst [1] : vector<8x256xf32> to vector<8xf32>
    %6 = vector.shape_cast %5 : vector<8xf32> to vector<8x1xf32>
    %7 = arith.addf %3, %6 : vector<8x1xf32>
    %c0_4 = arith.constant 0 : index
    %c0_5 = arith.constant 0 : index
    %8 = vector.load %arg3[%c0_4, %c0_5] : memref<8x1xf32, #tpu.memory_space<vmem>>, vector<8x1xf32>
    tpu.vector_store %arg3[%c0_4, %c0_5], %7 {strides = array<i32>} : memref<8x1xf32, #tpu.memory_space<vmem>>, vector<8x1xf32>,
    %c0_i32_6 = arith.constant 0 : i32
    %9 = arith.cmpi eq, %arg1, %c0_i32_6 : i32
    %10 = arith.extui %9 : i1 to i32
    %c0_i32_7 = arith.constant 0 : i32
    %11 = arith.cmpi ne, %10, %c0_i32_7 : i32
    scf.if %11 {
      %c0_8 = arith.constant 0 : index
      %c0_9 = arith.constant 0 : index
      %12 = vector.load %arg3[%c0_8, %c0_9] : memref<8x1xf32, #tpu.memory_space<vmem>>, vector<8x1xf32>
      %cst_10 = arith.constant 3.906250e-03 : f32
      %13 = vector.broadcast %cst_10 : f32 to vector<8x1xf32>
      %14 = arith.mulf %12, %13 : vector<8x1xf32>
      %c0_11 = arith.constant 0 : index
      %c0_12 = arith.constant 0 : index
      %15 = vector.load %arg3[%c0_11, %c0_12] : memref<8x1xf32, #tpu.memory_space<vmem>>, vector<8x1xf32>
      tpu.vector_store %arg3[%c0_11, %c0_12], %14 {strides = array<i32>} : memref<8x1xf32, #tpu.memory_space<vmem>>, vector<8x1xf32>,
    } else {
    }
    return
  }
  func.func @transform_0(%arg0: i32, %arg1: i32) -> (i32, i32) {
    %c0_i32 = arith.constant 0 : i32
    return %arg0, %arg1 : i32, i32
  }
  func.func @transform_1(%arg0: i32, %arg1: i32) -> (i32, i32) {
    %c0_i32 = arith.constant 0 : i32
    %c0_i32_0 = arith.constant 0 : i32
    return %arg0, %c0_i32 : i32, i32
  }
}

</mosaic_0001>

<bundles_post_ra>
// kernel: tpu_custom_call.1
= control target key start
LH: loop header
LB: loop body
LE: loop exit
PB: predicated region body
PF: predicated region fallthrough
CT: control target
= control target key end

     0   :  { %6 = vsyncpa [#allocation3], 0  ;;  %s76_s9 = smov [#allocation2]   ;;  %s106_s0 = inlined_call_operand.hbm [shape: f32[8,256], index: 0, kind: input, shape index: {}]   ;;  %s107_s1 = inlined_call_operand.vmem [shape: f32[8,1], index: 1, kind: output, shape index: {}]  }
   0x1   :  { %s12_s8 = sshll.u32 %s106_s0, 4  ;;  %s14_s10 = sshll.u32 %s76_s9, 4  ;;  %s13_s8 = int_to_ptr.hbm [resolvable:$true] %s12_s8  ;;  %s15_s10 = int_to_ptr.vmem [resolvable:$true] %s14_s10 }
   0x2   :  { %17 = dma.hbm_to_vmem [thread:$0]  %s13_s8, 256, %s15_s10, [#allocation3]  }
   0x3   :  { %74 = dma.done.wait [#allocation3], 256  }
   0x4   :  { %75 = vsyncadd [#allocation3], 4294967040  ;;  %vm26_vm0 = vcmask 7168   ;;  %v77_v0 = vmov 0.0   ;;  %v29_v1 = vld [vmem:[#allocation2] sm:$0xff]  ;;  %v30_v2 = vld [vmem:[#allocation2 + $0x8] sm:$0xff] }
   0x5   :  { %27 = vst.msk [vmem:[%s107_s1] sm:$0xff] %vm26_vm0, %v77_v0  ;;  %v31_v3 = vadd.f32 %v30_v2, %v29_v1 }
   0x7   :  { %32 = vadd.xlane.f32.xlu0 %v31_v3 }
   0xc   :  { %v28_v4 = vld [vmem:[%s107_s1] sm:$0xff] }
  0x7a   :  { %v33_v5 = vpop.xlane.xlu0 %32 }
  0x7b   :  { %v34_v6 = vadd.f32 %v33_v5, %v28_v4 }
  0x7d   :  { %36 = vst.msk [vmem:[%s107_s1] sm:$0xff] %vm26_vm0, %v34_v6 }
  0x84   :  { %v40_v7 = vld [vmem:[%s107_s1] sm:$0xff] }
  0x85   :  { %v41_v8 = vmul.f32 0.00390625, %v40_v7 }
  0x87   :  { %42 = vst.msk [vmem:[%s107_s1] sm:$0xff] %vm26_vm0, %v41_v8 }
  0x88   :  { %47 = vsyncpa [#allocation3], 1 }

</bundles_post_ra>
